<compile_context>
chip_gen: v6e
topology: v6e:2x2x1
jax: 0.10.0
libtpu: 0.0.40
codegen_flags: <defaults>
</compile_context>

<pallas_src>
import functools
import math

import jax
import jax.numpy as jnp
import numpy as np
from jax.experimental import pallas as pl
from jax.experimental.pallas import tpu as pltpu


def _cdiv(a, b):
    return -(-a // b)


def _round_up(x, m):
    return _cdiv(x, m) * m


def _packed_time_embedding_kernel(time_ref, aux_ref, out_ref, *, groups):
    """Lane-packed path (out_width < 128 and 128 % out_width == 0).

    time_ref: [TB, R]    f32 (R = groups timesteps per 128-lane output row)
    aux_ref:  [R+1, 128] f32 (rows 0..R-1: freq masked to lane-group g; row R: phase)
    out_ref:  [TB, 128]      (R packed embeddings per row)
    """
    arg = aux_ref[groups:groups + 1, :]                       # phase row, [1, 128]
    for g in range(groups):                                   # unrolled VPU mul-adds
        arg = arg + time_ref[:, g:g + 1] * aux_ref[g:g + 1, :]
    # cos(x) == sin(x + pi/2): one transcendental per element, single full-width store.
    out_ref[...] = jnp.sin(arg).astype(out_ref.dtype)


def _wide_time_embedding_kernel(time_ref, freq_ref, out_ref, *, half, split):
    """Wide path. time_ref: [TB, 1], freq_ref: [1, half], out_ref: [TB, 2*half]."""
    arg = time_ref[...] * freq_ref[...]                       # [TB, half]
    if split:
        # half % 128 == 0: both half-stores are 128-lane aligned; no concat temporary.
        out_ref[:, :half] = jnp.sin(arg).astype(out_ref.dtype)
        out_ref[:, half:] = jnp.cos(arg).astype(out_ref.dtype)
    else:
        # Generic fallback (awkward widths): single full-block store.
        out_ref[...] = jnp.concatenate(
            [jnp.sin(arg), jnp.cos(arg)], axis=-1).astype(out_ref.dtype)


def time_embedding(time, dim, *, out_dtype=jnp.float32,
                   vmem_budget_bytes=20 * 1024 * 1024, max_block_rows=2048):
    """time: [B] float -> [B, 2*(dim//2)] sinusoidal embedding (PyTorch TimeEmbedding)."""
    if dim < 4:
        # PyTorch divides by (half - 1); dim < 4 would silently produce inf/NaN.
        raise ValueError("TimeEmbedding requires dim >= 4")
    half = dim // 2
    out_width = 2 * half                        # == dim for even dim (PyTorch semantics)
    scale = math.log(10000.0) / (half - 1)
    freq_np = np.exp(np.arange(half, dtype=np.float64) * -scale).astype(np.float32)

    B = time.shape[0]
    time = time.astype(jnp.float32)
    out_bytes = jnp.dtype(out_dtype).itemsize

    packed = out_width < 128 and 128 % out_width == 0
    groups = 128 // out_width if packed else 1  # timesteps packed per output row
    lanes = 128 if packed else out_width        # output row width in lanes

    rows = _cdiv(B, groups)                     # output rows needed
    rows8 = _round_up(rows, 8)

    # VMEM-aware tile: double-buffered out block + ~4 f32 row temporaries per row.
    bytes_per_row = lanes * (2 * out_bytes + 4 * 4) + 4 * groups
    cap = max(8, min(max_block_rows, (vmem_budget_bytes // bytes_per_row) // 8 * 8))
    # >= 2 grid steps when there is enough work so both v7x TensorCores get a share of
    # the "parallel" batch axis; otherwise a single full-size block.
    grid_b = 1 if rows8 < 16 else max(2, _cdiv(rows8, cap))
    tb = _round_up(_cdiv(rows8, grid_b), 8)
    rows_pad = tb * grid_b
    b_pad = rows_pad * groups

    time_pad = time if b_pad == B else jnp.zeros((b_pad,), jnp.float32).at[:B].set(time)

    cost = pl.CostEstimate(
        flops=6 * rows_pad * lanes,
        transcendentals=rows_pad * lanes,
        bytes_accessed=rows_pad * lanes * out_bytes + b_pad * 4,
    )
    cparams = pltpu.CompilerParams(
        dimension_semantics=("parallel",),
        vmem_limit_bytes=32 * 1024 * 1024,
    )

    if packed:
        # aux rows 0..R-1: frequency folded into the 0/1 lane-group selection mask;
        # row R: +pi/2 phase on the cos lanes.  Built with numpy at trace time.
        lane = np.arange(128)
        feat = lane % out_width
        group = lane // out_width
        aux_np = np.zeros((groups + 1, 128), np.float32)
        aux_np[group, lane] = freq_np[feat % half]
        aux_np[groups, :] = np.where(feat >= half, np.pi / 2.0, 0.0).astype(np.float32)

        out = pl.pallas_call(
            functools.partial(_packed_time_embedding_kernel, groups=groups),
            out_shape=jax.ShapeDtypeStruct((rows_pad, 128), out_dtype),
            grid=(grid_b,),
            in_specs=[
                pl.BlockSpec((tb, groups), lambda i: (i, 0)),
                pl.BlockSpec((groups + 1, 128), lambda i: (0, 0)),
            ],
            out_specs=pl.BlockSpec((tb, 128), lambda i: (i, 0)),
            compiler_params=cparams,
            cost_estimate=cost,
        )(time_pad.reshape(rows_pad, groups), jnp.asarray(aux_np))
        # Free row-major reshape: packed row r holds timesteps r*R .. r*R+R-1.
        out = out.reshape(rows_pad * groups, out_width)
    else:
        split = (half % 128 == 0)
        out = pl.pallas_call(
            functools.partial(_wide_time_embedding_kernel, half=half, split=split),
            out_shape=jax.ShapeDtypeStruct((rows_pad, out_width), out_dtype),
            grid=(grid_b,),
            in_specs=[
                pl.BlockSpec((tb, 1), lambda i: (i, 0)),
                pl.BlockSpec((1, half), lambda i: (0, 0)),
            ],
            out_specs=pl.BlockSpec((tb, out_width), lambda i: (i, 0)),
            compiler_params=cparams,
            cost_estimate=cost,
        )(time_pad.reshape(rows_pad, 1), jnp.asarray(freq_np).reshape(1, half))

    # Elided when B already matches the padded size (avoids a full-output HBM copy).
    return out if out.shape[0] == B else out[:B]


if __name__ == "__main__":
    dim = 32          # embedding dim -> half_dim = 16 (lane-packed path, R = 4)
    B = 8             # batch of timesteps

    key = jax.random.PRNGKey(0)
    time = jax.random.uniform(key, (B,), dtype=jnp.float32) * 1000.0

    out = jax.block_until_ready(time_embedding(time, dim))
    assert out.shape == (B, dim)

    # Reference (mirrors the PyTorch forward).  Tolerance is looser than 1e-5 because
    # sin/cos of arguments up to ~1e3 go through f32 range reduction on the EUP and the
    # kernel evaluates cos(x) as sin(x + pi/2); both effects are O(x * 2^-24) ~ 6e-5.
    emb_buf = jnp.exp(jnp.arange(dim // 2, dtype=jnp.float32)
                      * -jnp.float32(math.log(10000.0) / (dim // 2 - 1)))
    arg_ref = time[:, None] * emb_buf[None, :]
    ref = jnp.concatenate([jnp.sin(arg_ref), jnp.cos(arg_ref)], axis=-1)

    err = float(jnp.max(jnp.abs(out - ref)))
    assert err < 1e-3, f"max abs err {err}"

    print("KERNEL_OK")
</pallas_src>

<mosaic_0001>
module attributes {stable_mosaic.version = 11 : i64} {
  func.func @_packed_time_embedding_kernel(%arg0: i32, %arg1: memref<8x4xf32, #tpu.memory_space<vmem>>, %arg2: memref<5x128xf32, #tpu.memory_space<vmem>>, %arg3: memref<8x128xf32, #tpu.memory_space<vmem>>) attributes {dimension_semantics = [#tpu.dimension_semantics<parallel>], iteration_bounds = array<i64: 1>, scalar_prefetch = 0 : i64, scratch_operands = 0 : i64, tpu.core_type = #tpu.core_type<tc>, window_params = [{transform_indices = @transform_0, window_bounds = array<i64: 8, 4>}, {pipeline_mode = #tpu.pipeline_mode<synchronous>, transform_indices = @transform_1, window_bounds = array<i64: 5, 128>}, {transform_indices = @transform_2, window_bounds = array<i64: 8, 128>}]} {
    %c4 = arith.constant 4 : index
    %c0 = arith.constant 0 : index
    %0 = vector.load %arg2[%c4, %c0] : memref<5x128xf32, #tpu.memory_space<vmem>>, vector<1x128xf32>
    %c0_0 = arith.constant 0 : index
    %c0_1 = arith.constant 0 : index
    %1 = vector.load %arg1[%c0_0, %c0_1] : memref<8x4xf32, #tpu.memory_space<vmem>>, vector<8x1xf32>
    %c0_2 = arith.constant 0 : index
    %c0_3 = arith.constant 0 : index
    %2 = vector.load %arg2[%c0_2, %c0_3] : memref<5x128xf32, #tpu.memory_space<vmem>>, vector<1x128xf32>
    %3 = vector.broadcast %1 : vector<8x1xf32> to vector<8x128xf32>
    %4 = vector.broadcast %2 : vector<1x128xf32> to vector<8x128xf32>
    %5 = arith.mulf %3, %4 : vector<8x128xf32>
    %6 = vector.broadcast %0 : vector<1x128xf32> to vector<8x128xf32>
    %7 = arith.addf %6, %5 : vector<8x128xf32>
    %c0_4 = arith.constant 0 : index
    %c1 = arith.constant 1 : index
    %8 = vector.load %arg1[%c0_4, %c1] : memref<8x4xf32, #tpu.memory_space<vmem>>, vector<8x1xf32>
    %c1_5 = arith.constant 1 : index
    %c0_6 = arith.constant 0 : index
    %9 = vector.load %arg2[%c1_5, %c0_6] : memref<5x128xf32, #tpu.memory_space<vmem>>, vector<1x128xf32>
    %10 = vector.broadcast %8 : vector<8x1xf32> to vector<8x128xf32>
    %11 = vector.broadcast %9 : vector<1x128xf32> to vector<8x128xf32>
    %12 = arith.mulf %10, %11 : vector<8x128xf32>
    %13 = arith.addf %7, %12 : vector<8x128xf32>
    %c0_7 = arith.constant 0 : index
    %c2 = arith.constant 2 : index
    %14 = vector.load %arg1[%c0_7, %c2] : memref<8x4xf32, #tpu.memory_space<vmem>>, vector<8x1xf32>
    %c2_8 = arith.constant 2 : index
    %c0_9 = arith.constant 0 : index
    %15 = vector.load %arg2[%c2_8, %c0_9] : memref<5x128xf32, #tpu.memory_space<vmem>>, vector<1x128xf32>
    %16 = vector.broadcast %14 : vector<8x1xf32> to vector<8x128xf32>
    %17 = vector.broadcast %15 : vector<1x128xf32> to vector<8x128xf32>
    %18 = arith.mulf %16, %17 : vector<8x128xf32>
    %19 = arith.addf %13, %18 : vector<8x128xf32>
    %c0_10 = arith.constant 0 : index
    %c3 = arith.constant 3 : index
    %20 = vector.load %arg1[%c0_10, %c3] : memref<8x4xf32, #tpu.memory_space<vmem>>, vector<8x1xf32>
    %c3_11 = arith.constant 3 : index
    %c0_12 = arith.constant 0 : index
    %21 = vector.load %arg2[%c3_11, %c0_12] : memref<5x128xf32, #tpu.memory_space<vmem>>, vector<1x128xf32>
    %22 = vector.broadcast %20 : vector<8x1xf32> to vector<8x128xf32>
    %23 = vector.broadcast %21 : vector<1x128xf32> to vector<8x128xf32>
    %24 = arith.mulf %22, %23 : vector<8x128xf32>
    %25 = arith.addf %19, %24 : vector<8x128xf32>
    %26 = math.sin %25 : vector<8x128xf32>
    %c0_13 = arith.constant 0 : index
    %c0_14 = arith.constant 0 : index
    %27 = vector.load %arg3[%c0_13, %c0_14] : memref<8x128xf32, #tpu.memory_space<vmem>>, vector<8x128xf32>
    tpu.vector_store %arg3[%c0_13, %c0_14], %26 {strides = array<i32>} : memref<8x128xf32, #tpu.memory_space<vmem>>, vector<8x128xf32>,
    return
  }
  func.func @transform_0(%arg0: i32) -> (i32, i32) {
    %c0_i32 = arith.constant 0 : i32
    %c0_i32_0 = arith.constant 0 : i32
    return %arg0, %c0_i32 : i32, i32
  }
  func.func @transform_1(%arg0: i32) -> (i32, i32) {
    %c0_i32 = arith.constant 0 : i32
    %c0_i32_0 = arith.constant 0 : i32
    %c0_i32_1 = arith.constant 0 : i32
    return %c0_i32, %c0_i32_0 : i32, i32
  }
  func.func @transform_2(%arg0: i32) -> (i32, i32) {
    %c0_i32 = arith.constant 0 : i32
    %c0_i32_0 = arith.constant 0 : i32
    return %arg0, %c0_i32 : i32, i32
  }
}

</mosaic_0001>

<bundles_post_ra>
// kernel: tpu_custom_call.1
= control target key start
LH: loop header
LB: loop body
LE: loop exit
PB: predicated region body
PF: predicated region fallthrough
CT: control target
= control target key end

     0   :  { %v237_v1 = vmov 0   ;;  %v238_v2 = vmov 2   ;;  %s305_s0 = inlined_call_operand.vmem [shape: f32[8,4], index: 0, kind: input, shape index: {}]   ;;  %s306_s1 = inlined_call_operand.vmem [shape: f32[5,128], index: 1, kind: input, shape index: {}]   ;;  %s307_s2 = inlined_call_operand.hbm [shape: f32[8,128], index: 2, kind: output, shape index: {}]  }
   0x1   :  { %v13_v0 = vld [vmem:[%s305_s0] sm:$0xff]  ;;  %206 = vset.pattern.permute.xlu0 %v237_v1  ;;  %208 = vset.pattern.permute.xlu1 %v238_v2 }
   0x2   :  { %17 = vperm.xlu0 %206, %v13_v0   ;;  %43 = vperm.xlu1 %208, %v13_v0  }
   0x3   :  { %7 = vsyncpa [#allocation3], 0  ;;  %v239_v3 = vmov 1   ;;  %v240_v4 = vmov 3   ;;  %v182_v5 = vld [vmem:[%s306_s1] ss:$0 sm:$0xff] }
   0x4   :  { %v183_v9 = vld [vmem:[%s306_s1 + $0x4] ss:$0 sm:$0xff]  ;;  %v184_v10 = vld [vmem:[%s306_s1 + $0x1] ss:$0 sm:$0xff]  ;;  %v185_v11 = vld [vmem:[%s306_s1 + $0x2] ss:$0 sm:$0xff] }
   0x5   :  { %v186_v13 = vld [vmem:[%s306_s1 + $0x3] ss:$0 sm:$0xff]  ;;  %v241_v33 = vmov 2102212464   ;;  %v242_v35 = vmov 920167782  }
   0x6   :  { %207 = vset.pattern.permute.xlu0 %v239_v3  ;;  %209 = vset.pattern.permute.xlu1 %v240_v4  ;;  %v243_v39 = vmov 1326507024   ;;  %v244_v41 = vmov 683565275   ;;  %v245_v43 = vmov 2475754826  }
   0x7   :  { %32 = vperm.xlu0 %207, %v13_v0   ;;  %54 = vperm.xlu1 %209, %v13_v0   ;;  %v246_v46 = vmov 2131351028   ;;  %s247_s1 = smov [#allocation2]  }
   0x8   :  { %s174_s20 = sshll.u32 %s247_s1, 4  ;;  %s175_s20 = int_to_ptr.vmem [resolvable:$true] %s174_s20 }
   0x9   :  { %s215_s21 = scalar_lea.vmem %s175_s20, 128  ;;  %p220_p1 = scmp.lt.s32.totalorder %s175_s20, %s175_s20 }
   0xa   :  { %p216_p0 = scmp.ne.s32.totalorder %s175_s20, %s215_s21  ;;  %p221_p2 = scmp.lt.s32.totalorder %s215_s21, %s215_s21 }
   0xb   :  { %210 = vset.pattern.permute.xlu0 %v240_v4 }
   0xc   :  { %p222_p3 = por %p221_p2, %p220_p1 }
   0xe   :  { %p223_p4 = pnand %p222_p3, %p216_p0 }
  0x7d   :  { %v18_v6 = vpop.permute.xlu0 %17  ;;  %v44_v7 = vpop.permute.xlu1 %43 }
  0x7e   :  { %v24_v8 = vmul.f32 %v182_v5, %v18_v6  ;;  %v50_v17 = vmul.f32 %v185_v11, %v44_v7 }
  0x80   :  { %v29_v15 = vadd.f32 %v183_v9, %v24_v8 }
  0x82   :  { %v33_v12 = vpop.permute.xlu0 %32  ;;  %v55_v14 = vpop.permute.xlu1 %54 }
  0x83   :  { %v39_v16 = vmul.f32 %v184_v10, %v33_v12  ;;  %v61_v19 = vmul.f32 %v186_v13, %v55_v14 }
  0x85   :  { %v40_v18 = vadd.f32 %v39_v16, %v29_v15 }
  0x87   :  { %v51_v20 = vadd.f32 %v50_v17, %v40_v18 }
  0x89   :  { %v281_v21 = vadd.f32 %v61_v19, %v51_v20 }
  0x8b   :  { %v66_v22 = vand.u32 2139095040, %v281_v21  ;;  %v63_v23 = vand.u32 2147483647, %v281_v21  ;;  %vm65_vm7 = vcmp.lt.s32.totalorder %v281_v21, 0  ;;  %vm155_vm12 = vweird.f32 %v281_v21 }
  0x8d   :  { %v67_v24 = vshrl.u32 %v66_v22, 23  ;;  %v70_v26 = vand.u32 8388607, %v63_v23  ;;  %vm64_vm8 = vcmp.le.f32.partialorder %v63_v23, 0.7853982 }
  0x8f   :  { %v187_v25 = vadd.s32 4294967169, %v67_v24  ;;  %v71_v29 = vor.u32 8388608, %v70_v26 }
  0x91   :  { %v73_v27 = vadd.s32 1, %v187_v25  ;;  %v111_v37 = vshll.u32 %v71_v29, 8 }
  0x93   :  { %vm74_vm0 = vcmp.gt.s32.totalorder %v73_v27, 0 }
  0x94   :  { %v75_v28 = vsel %vm74_vm0, %v73_v27, 0 }
  0x95   :  { %v77_v30 = vand.u32 31, %v75_v28  ;;  %v76_v31 = vshrl.u32 %v75_v28, 5 }
  0x97   :  { %v78_v32 = vsub.s32 32, %v77_v30  ;;  %v89_v34 = vshll.u32 %v241_v33, %v77_v30  ;;  %v92_v36 = vshll.u32 %v242_v35, %v77_v30  ;;  %v80_v42 = vshll.u32 %v244_v41, %v77_v30 }
  0x98   :  { %v83_v45 = vshll.u32 %v245_v43, %v77_v30  ;;  %v86_v48 = vshll.u32 %v246_v46, %v77_v30  ;;  %vm98_vm1 = vcmp.lt.s32.totalorder %v76_v31, 4  ;;  %vm95_vm2 = vcmp.lt.s32.totalorder %v76_v31, 1 }
  0x99   :  { %v90_v38 = vshrl.u32 %v242_v35, %v78_v32  ;;  %v93_v40 = vshrl.u32 %v243_v39, %v78_v32  ;;  %v81_v44 = vshrl.u32 %v245_v43, %v78_v32  ;;  %v84_v47 = vshrl.u32 %v246_v46, %v78_v32 }
  0x9a   :  { %v87_v49 = vshrl.u32 %v241_v33, %v78_v32  ;;  %v79_v53 = vshrl.u32 %v244_v41, %v78_v32  ;;  %vm96_vm3 = vcmp.lt.s32.totalorder %v76_v31, 2  ;;  %vm97_vm4 = vcmp.lt.s32.totalorder %v76_v31, 3 }
  0x9b   :  { %v91_v50 = vor.u32 %v90_v38, %v89_v34  ;;  %v94_v51 = vor.u32 %v93_v40, %v92_v36  ;;  %v82_v52 = vor.u32 %v81_v44, %v80_v42  ;;  %v85_v54 = vor.u32 %v84_v47, %v83_v45 }
  0x9c   :  { %v88_v55 = vor.u32 %v87_v49, %v86_v48 }
  0x9d   :  { %v104_v56 = vsel %vm98_vm1, %v91_v50, 920167782  ;;  %v108_v57 = vsel %vm98_vm1, %v94_v51, 1326507024  ;;  %v103_v59 = vsel %vm95_vm2, %v82_v52, %v85_v54  ;;  %v99_v62 = vsel %vm95_vm2, %v79_v53, %v82_v52 }
  0x9e   :  { %v100_v58 = vsel %vm98_vm1, %v88_v55, 2102212464  ;;  %v105_v60 = vsel %vm97_vm4, %v88_v55, %v104_v56  ;;  %v107_v61 = vsel %vm95_vm2, %v85_v54, %v88_v55  ;;  %v109_v1 = vsel %vm97_vm4, %v91_v50, %v108_v57 }
  0x9f   :  { %v101_v63 = vsel %vm97_vm4, %v85_v54, %v100_v58  ;;  %v106_v0 = vsel %vm96_vm3, %v103_v59, %v105_v60  ;;  %v110_v2 = vsel %vm96_vm3, %v107_v61, %v109_v1 }
  0xa0   :  { %v287_v3 = vmul.u32.u64.low %v111_v37, %v106_v0  ;;  %v288_v4 = vmul.u32.u64.high %v111_v37, %v106_v0, %v287_v3  ;;  %v290_v5 = vmul.u32.u64.low %v111_v37, %v110_v2  ;;  %v291_v6 = vmul.u32.u64.high %v111_v37, %v110_v2, %v290_v5 }
  0xa1   :  { %v102_v7 = vsel %vm96_vm3, %v99_v62, %v101_v63 }
  0xa2   :  { %v121_v8 = vadd.s32 1, %v288_v4  ;;  %v118_v9 = vmul.u32 %v111_v37, %v102_v7  ;;  %vm120_vm5 = vc.u32 %v291_v6, %v287_v3  ;;  %v119_v22 = vadd.s32 %v287_v3, %v291_v6 }
  0xa4   :  { %v122_v10 = vsel %vm120_vm5, %v121_v8, %v288_v4 }
  0xa5   :  { %v123_v11 = vadd.s32 %v122_v10, %v118_v9 }
  0xa7   :  { %v124_v12 = vadd.s32 536870912, %v123_v11 }
  0xa9   :  { %v125_v13 = vshrl.u32 %v124_v12, 30 }
  0xab   :  { %v126_v14 = vshll.u32 %v125_v13, 30  ;;  %v149_v36 = vsub.s32 4, %v125_v13 }
  0xad   :  { %v127_v15 = vsub.s32 %v123_v11, %v126_v14  ;;  %v150_v39 = vsel %vm65_vm7, %v149_v36, %v125_v13 }
  0xae   :  { %v152_v40 = vsel %vm64_vm8, 0, %v150_v39 }
  0xaf   :  { %v129_v16 = vsub.s32 0, %v127_v15  ;;  %v156_v41 = vadd.s32 3, %v152_v40 }
  0xb1   :  { %v188_v17 = vmin.u32 %v129_v16, %v127_v15  ;;  %v157_v42 = vand.u32 3, %v156_v41 }
  0xb3   :  { %v131_v18 = vclz %v188_v17  ;;  %vm162_vm9 = vcmp.eq.s32.totalorder %v157_v42, 2  ;;  %vm159_vm10 = vcmp.eq.s32.totalorder %v157_v42, 0  ;;  %vm158_vm11 = vcmp.lt.s32.totalorder %v157_v42, 2 }
  0xb5   :  { %v189_v19 = vadd.s32 4294967294, %v131_v18 }
  0xb7   :  { %vm190_vm6 = vcmp.lt.s32.totalorder %v189_v19, 0 }
  0xb8   :  { %v134_v20 = vsel %vm190_vm6, 0, %v189_v19 }
  0xb9   :  { %v135_v24 = vsub.s32 32, %v134_v20  ;;  %v139_v25 = vsub.s32 4294967266, %v134_v20  ;;  %v136_v26 = vshll.u32 %v127_v15, %v134_v20 }
  0xbb   :  { %v137_v27 = vshrl.u32 %v119_v22, %v135_v24  ;;  %v140_v28 = vadd.s32 127, %v139_v25 }
  0xbd   :  { %v138_v29 = vor.u32 %v137_v27, %v136_v26  ;;  %v141_v30 = vshll.u32 %v140_v28, 23 }
  0xbf   :  { %v142_v31 = vor.u32 4788187, %v141_v30  ;;  %v145_v33 = vcvt.s32.f32 %v138_v29 }
  0xc1   :  { %v143_v32 = vand.u32 2147483647, %v142_v31 }
  0xc3   :  { %v146_v34 = vmul.f32 %v145_v33, %v143_v32 }
  0xc5   :  { %v147_v35 = vxor.u32 2147483648, %v146_v34 }
  0xc7   :  { %v148_v37 = vsel %vm65_vm7, %v147_v35, %v146_v34 }
  0xc8   :  { %v151_v38 = vsel %vm64_vm8, %v281_v21, %v148_v37 }
  0xc9   :  { %211 = vcosq.f32 %v151_v38 }
  0xca   :  { %213 = vsinq.f32 %v151_v38 }
  0xd6   :  { %v212_v43 = vpop.eup %211 }
  0xd7   :  { %v214_v44 = vpop.eup %213  ;;  %v163_v45 = vxor.u32 2147483648, %v212_v43 }
  0xd8   :  { %v160_v46 = vxor.u32 2147483648, %v214_v44 }
  0xd9   :  { %v164_v47 = vsel %vm162_vm9, %v163_v45, %v214_v44 }
  0xda   :  { %v161_v23 = vsel %vm159_vm10, %v212_v43, %v160_v46 }
  0xdb   :  { %v165_v48 = vsel %vm158_vm11, %v161_v23, %v164_v47 }
  0xdc   :  { %v166_v49 = vsel %vm155_vm12, nan, %v165_v48 }
  0xdd   :  { %167 = vst [vmem:[#allocation2] sm:$0xff] %v166_v49 }
  0xde   :  { %226 = shalt.err (!%p223_p4)
}
  0xdf   :  { %177 = dma.vmem_to_hbm [thread:$0]  %s175_s20, 128, %s307_s2, [#allocation3]  }
  0xe0   :  { %235 = dma.done.wait [#allocation3], 128  }
  0xe1   :  { %236 = vsyncadd [#allocation3], 4294967168 }
  0xe2   :  { %181 = vsyncpa [#allocation3], 1 }

</bundles_post_ra>
